<compile_context>
chip_gen: v7x
topology: tpu7x:2x2x1
jax: 0.10.0
libtpu: 0.0.40
codegen_flags: <defaults>
</compile_context>

<pallas_src>
import math

import jax
import jax.numpy as jnp
from jax import lax
from jax.experimental import pallas as pl
from jax.experimental.pallas import tpu as pltpu


def _round_up(x: int, m: int) -> int:
    return (x + m - 1) // m * m


def _make_kernel(tile_r: int, tile_s: int, R: int, S: int):
    """Build the kernel body with trace-time knowledge of tail masking needs."""
    need_lane_mask = (S % tile_s) != 0
    need_row_mask = (R % tile_r) != 0

    def kernel(w_ref, pred_ref, targ_ref, out_ref, acc_ref):
        # grid = (row_blocks, lane_blocks); row axis "parallel", lane "arbitrary"
        r = pl.program_id(0)
        s = pl.program_id(1)

        @pl.when(s == 0)
        def _():
            acc_ref[...] = jnp.zeros_like(acc_ref)

        diff = pred_ref[...].astype(jnp.float32) - targ_ref[...].astype(jnp.float32)

        if need_lane_mask or need_row_mask:
            valid = None
            if need_lane_mask:
                lane = lax.broadcasted_iota(jnp.int32, (tile_r, tile_s), 1)
                valid = (lane + s * tile_s) < S
            if need_row_mask:
                row = lax.broadcasted_iota(jnp.int32, (tile_r, tile_s), 0)
                rv = (row + r * tile_r) < R
                valid = rv if valid is None else (valid & rv)
            diff = jnp.where(valid, diff, jnp.float32(0.0))

        # Per-step lane reduction into a tiny (tile_r, 1) accumulator.
        acc_ref[...] += jnp.sum(diff * diff, axis=-1, keepdims=True)

        @pl.when(s == pl.num_programs(1) - 1)
        def _():
            # Weights (penalty / mean divisor / 1/C) applied once, in epilogue.
            total = jnp.sum(acc_ref[...] * w_ref[...])
            # Lane-dense, tile-aligned partial output for this row block.
            out_ref[...] = jnp.broadcast_to(total, out_ref.shape)

    return kernel


def regression_loss(prediction: jax.Array,
                    target: jax.Array,
                    penalty_weights: jax.Array,
                    reduction: str = "mean") -> jax.Array:
    """Pallas implementation of AbstractRegressionLoss.forward (MSE calculator)."""
    assert prediction.shape == target.shape
    assert prediction.ndim >= 2, "expected (N, C, *spatial)"
    assert reduction in ("mean", "sum")

    N, C = prediction.shape[0], prediction.shape[1]
    S = int(math.prod(prediction.shape[2:])) if prediction.ndim > 2 else 1
    R = N * C
    per_class_elems = N * S  # true (unpadded) element count of pred[:, c, ...]

    # Fold reduction-mean factor, final /C, and penalty weights into a
    # per-row weight:  w_row[n*C + c] = pw[c] / (N*S if mean) / C
    w_eff = penalty_weights.astype(jnp.float32)
    if reduction == "mean":
        w_eff = w_eff / jnp.float32(per_class_elems)
    w_eff = w_eff / jnp.float32(C)
    w_row = jnp.tile(w_eff, N)               # (R,), rows ordered (n, c) row-major

    # Free contiguous reshape: (N, C, *spatial) -> (R, S). Lane axis = S.
    pred2d = prediction.reshape(R, S)
    targ2d = target.reshape(R, S)

    # Sublane fold for tiny R: (R, S) -> (R*k, S/k) keeps >= 8 dense sublanes.
    if R < 8 and S > 1:
        k = -(-8 // R)                       # ceil(8 / R)
        if S % k == 0:
            pred2d = pred2d.reshape(R * k, S // k)
            targ2d = targ2d.reshape(R * k, S // k)
            w_row = jnp.repeat(w_row, k)
            R, S = R * k, S // k
    w_row = w_row.reshape(R, 1)

    # ---- Tile sizing: byte-budgeted, no artificial lane cap ------------------
    item = pred2d.dtype.itemsize
    block_budget = 3 << 20                   # ~3 MiB per input block (native dtype)
    tile_r = R if R <= 512 else 512          # multiple of 8, or == full dim
    if S <= 128:
        tile_s = S                           # block last dim == full array dim
    else:
        max_tile_s = max(128, (block_budget // (tile_r * item)) // 128 * 128)
        tile_s = min(_round_up(S, 128), max_tile_s)

    n_r = -(-R // tile_r)
    n_s = -(-S // tile_s)

    # Pad only the tiny per-row weight vector (zeros for padded rows).
    r_pad = n_r * tile_r
    if r_pad != R:
        w_row = jnp.pad(w_row, ((0, r_pad - R), (0, 0)))

    cost = pl.CostEstimate(
        flops=3 * R * S,
        transcendentals=0,
        bytes_accessed=2 * R * S * item + r_pad * 4 + n_r * 8 * 128 * 4,
    )

    grid_spec = pltpu.PrefetchScalarGridSpec(
        num_scalar_prefetch=0,
        grid=(n_r, n_s),
        in_specs=[
            pl.BlockSpec((tile_r, 1), lambda r, s: (r, 0)),       # per-row weights
            pl.BlockSpec((tile_r, tile_s), lambda r, s: (r, s)),  # prediction tile
            pl.BlockSpec((tile_r, tile_s), lambda r, s: (r, s)),  # target tile
        ],
        out_specs=pl.BlockSpec((1, 8, 128), lambda r, s: (r, 0, 0)),
        scratch_shapes=[pltpu.VMEM((tile_r, 1), jnp.float32)],
    )

    partials = pl.pallas_call(
        _make_kernel(tile_r, tile_s, R, S),
        out_shape=jax.ShapeDtypeStruct((n_r, 8, 128), jnp.float32),
        grid_spec=grid_spec,
        compiler_params=pltpu.CompilerParams(
            dimension_semantics=("parallel", "arbitrary"),
        ),
        cost_estimate=cost,
    )(w_row, pred2d, targ2d)

    # Each row block replicated its scalar partial; take one lane per block.
    return jnp.sum(partials[:, 0, 0])


def regression_loss_ref(prediction, target, penalty_weights, reduction="mean"):
    """Pure-JAX reference mirroring the PyTorch forward loop exactly."""
    C = prediction.shape[1]
    acc = jnp.float32(0.0)
    for c in range(C):
        d = (prediction[:, c, ...].astype(jnp.float32)
             - target[:, c, ...].astype(jnp.float32))
        per_class = jnp.sum(d * d)
        if reduction == "mean":
            per_class = per_class / d.size
        acc = acc + per_class * penalty_weights[c].astype(jnp.float32)
    return acc / C


if __name__ == "__main__":
    key = jax.random.PRNGKey(0)
    k1, k2, k3, k4 = jax.random.split(key, 4)

    # Case 1: batch=2, num_classes=4, spatial=16x16 (aligned shapes).
    N, C, H, W = 2, 4, 16, 16
    prediction = jax.random.normal(k1, (N, C, H, W), dtype=jnp.float32)
    target = jax.random.normal(k2, (N, C, H, W), dtype=jnp.float32)
    penalty_weights = jnp.ones((C,), dtype=jnp.float32)  # default init

    loss = jax.block_until_ready(
        regression_loss(prediction, target, penalty_weights, "mean"))
    ref = regression_loss_ref(prediction, target, penalty_weights, "mean")
    assert jnp.allclose(loss, ref, rtol=1e-5, atol=1e-6), (loss, ref)

    loss_sum = jax.block_until_ready(
        regression_loss(prediction, target, penalty_weights, "sum"))
    ref_sum = regression_loss_ref(prediction, target, penalty_weights, "sum")
    assert jnp.allclose(loss_sum, ref_sum, rtol=1e-5, atol=1e-4), (loss_sum, ref_sum)

    # Case 2: odd spatial size (17x17) exercising the in-kernel lane-tail mask
    # (no wrapper padding of the big arrays), with non-uniform penalty weights.
    N2, C2, H2, W2 = 2, 4, 17, 17
    pred2 = jax.random.normal(k3, (N2, C2, H2, W2), dtype=jnp.float32)
    targ2 = jax.random.normal(k4, (N2, C2, H2, W2), dtype=jnp.float32)
    pw2 = jnp.arange(1, C2 + 1, dtype=jnp.float32) / C2

    loss2 = jax.block_until_ready(regression_loss(pred2, targ2, pw2, "mean"))
    ref2 = regression_loss_ref(pred2, targ2, pw2, "mean")
    assert jnp.allclose(loss2, ref2, rtol=1e-5, atol=1e-6), (loss2, ref2)

    print("KERNEL_OK")
</pallas_src>

<mosaic_0001>
module attributes {stable_mosaic.version = 11 : i64} {
  func.func @kernel(%arg0: i32, %arg1: i32, %arg2: memref<8x1xf32, #tpu.memory_space<vmem>>, %arg3: memref<8x256xf32, #tpu.memory_space<vmem>>, %arg4: memref<8x256xf32, #tpu.memory_space<vmem>>, %arg5: memref<1x8x128xf32, #tpu.memory_space<vmem>>, %arg6: memref<8x1xf32, #tpu.memory_space<vmem>>) attributes {dimension_semantics = [#tpu.dimension_semantics<parallel>, #tpu.dimension_semantics<arbitrary>], iteration_bounds = array<i64: 1, 1>, scalar_prefetch = 0 : i64, scratch_operands = 1 : i64, tpu.core_type = #tpu.core_type<tc>, window_params = [{transform_indices = @transform_0, window_bounds = array<i64: 8, 1>}, {transform_indices = @transform_1, window_bounds = array<i64: 8, 256>}, {transform_indices = @transform_2, window_bounds = array<i64: 8, 256>}, {transform_indices = @transform_3, window_bounds = array<i64: 1, 8, 128>}]} {
    %c0_i32 = arith.constant 0 : i32
    %0 = arith.cmpi eq, %arg1, %c0_i32 : i32
    %1 = arith.extui %0 : i1 to i32
    %c0_i32_0 = arith.constant 0 : i32
    %2 = arith.cmpi ne, %1, %c0_i32_0 : i32
    scf.if %2 {
      %cst_10 = arith.constant 0.000000e+00 : f32
      %15 = vector.broadcast %cst_10 : f32 to vector<8x1xf32>
      %c0_11 = arith.constant 0 : index
      %c0_12 = arith.constant 0 : index
      %16 = vector.load %arg6[%c0_11, %c0_12] : memref<8x1xf32, #tpu.memory_space<vmem>>, vector<8x1xf32>
      tpu.vector_store %arg6[%c0_11, %c0_12], %15 {strides = array<i32>} : memref<8x1xf32, #tpu.memory_space<vmem>>, vector<8x1xf32>,
    } else {
    }
    %c0 = arith.constant 0 : index
    %c0_1 = arith.constant 0 : index
    %3 = vector.load %arg3[%c0, %c0_1] : memref<8x256xf32, #tpu.memory_space<vmem>>, vector<8x256xf32>
    %c0_2 = arith.constant 0 : index
    %c0_3 = arith.constant 0 : index
    %4 = vector.load %arg4[%c0_2, %c0_3] : memref<8x256xf32, #tpu.memory_space<vmem>>, vector<8x256xf32>
    %5 = arith.subf %3, %4 : vector<8x256xf32>
    %c0_4 = arith.constant 0 : index
    %c0_5 = arith.constant 0 : index
    %6 = vector.load %arg6[%c0_4, %c0_5] : memref<8x1xf32, #tpu.memory_space<vmem>>, vector<8x1xf32>
    %7 = arith.mulf %5, %5 : vector<8x256xf32>
    %cst = arith.constant dense<0.000000e+00> : vector<8xf32>
    %8 = vector.multi_reduction <add>, %7, %cst [1] : vector<8x256xf32> to vector<8xf32>
    %9 = vector.shape_cast %8 : vector<8xf32> to vector<8x1xf32>
    %10 = arith.addf %6, %9 : vector<8x1xf32>
    %c0_6 = arith.constant 0 : index
    %c0_7 = arith.constant 0 : index
    %11 = vector.load %arg6[%c0_6, %c0_7] : memref<8x1xf32, #tpu.memory_space<vmem>>, vector<8x1xf32>
    tpu.vector_store %arg6[%c0_6, %c0_7], %10 {strides = array<i32>} : memref<8x1xf32, #tpu.memory_space<vmem>>, vector<8x1xf32>,
    %c0_i32_8 = arith.constant 0 : i32
    %12 = arith.cmpi eq, %arg1, %c0_i32_8 : i32
    %13 = arith.extui %12 : i1 to i32
    %c0_i32_9 = arith.constant 0 : i32
    %14 = arith.cmpi ne, %13, %c0_i32_9 : i32
    scf.if %14 {
      %c0_10 = arith.constant 0 : index
      %c0_11 = arith.constant 0 : index
      %15 = vector.load %arg6[%c0_10, %c0_11] : memref<8x1xf32, #tpu.memory_space<vmem>>, vector<8x1xf32>
      %c0_12 = arith.constant 0 : index
      %c0_13 = arith.constant 0 : index
      %16 = vector.load %arg2[%c0_12, %c0_13] : memref<8x1xf32, #tpu.memory_space<vmem>>, vector<8x1xf32>
      %17 = arith.mulf %15, %16 : vector<8x1xf32>
      %18 = vector.shape_cast %17 : vector<8x1xf32> to vector<1x8x1xf32>
      %cst_14 = arith.constant dense<0.000000e+00> : vector<1xf32>
      %19 = vector.multi_reduction <add>, %18, %cst_14 [1, 2] : vector<1x8x1xf32> to vector<1xf32>
      %20 = vector.shape_cast %19 : vector<1xf32> to vector<1x1x1xf32>
      %21 = vector.extract %20[0, 0, 0] : f32 from vector<1x1x1xf32>
      %22 = vector.broadcast %21 : f32 to vector<1x8x128xf32>
      %c0_15 = arith.constant 0 : index
      %c0_16 = arith.constant 0 : index
      %c0_17 = arith.constant 0 : index
      %23 = vector.load %arg5[%c0_15, %c0_16, %c0_17] : memref<1x8x128xf32, #tpu.memory_space<vmem>>, vector<1x8x128xf32>
      tpu.vector_store %arg5[%c0_15, %c0_16, %c0_17], %22 {strides = array<i32>} : memref<1x8x128xf32, #tpu.memory_space<vmem>>, vector<1x8x128xf32>,
    } else {
    }
    return
  }
  func.func @transform_0(%arg0: i32, %arg1: i32) -> (i32, i32) {
    %c0_i32 = arith.constant 0 : i32
    %c0_i32_0 = arith.constant 0 : i32
    return %arg0, %c0_i32 : i32, i32
  }
  func.func @transform_1(%arg0: i32, %arg1: i32) -> (i32, i32) {
    %c0_i32 = arith.constant 0 : i32
    return %arg0, %arg1 : i32, i32
  }
  func.func @transform_2(%arg0: i32, %arg1: i32) -> (i32, i32) {
    %c0_i32 = arith.constant 0 : i32
    return %arg0, %arg1 : i32, i32
  }
  func.func @transform_3(%arg0: i32, %arg1: i32) -> (i32, i32, i32) {
    %c0_i32 = arith.constant 0 : i32
    %c0_i32_0 = arith.constant 0 : i32
    %c0_i32_1 = arith.constant 0 : i32
    return %arg0, %c0_i32, %c0_i32_0 : i32, i32, i32
  }
}

</mosaic_0001>

<bundles_post_ra>
// kernel: tpu_custom_call.1
= control target key start
LH: loop header
LB: loop body
LE: loop exit
PB: predicated region body
PF: predicated region fallthrough
CT: control target
= control target key end

     0   :  { %8 = vsyncpa [#allocation4], 0  ;;  %s193_s0 = inlined_call_operand.vmem [shape: f32[8,1], index: 0, kind: input, shape index: {}]   ;;  %s194_s1 = inlined_call_operand.hbm [shape: f32[8,256], index: 1, kind: input, shape index: {}]   ;;  %s195_s2 = inlined_call_operand.vmem [shape: f32[8,256], index: 2, kind: input, shape index: {}]   ;;  %s196_s3 = inlined_call_operand.hbm [shape: f32[1,8,128], index: 3, kind: output, shape index: {}]  }
   0x1   :  { %9 = vsyncpa [#allocation5], 0  ;;  %s134_s12 = smov [#allocation3]   ;;  %s86_s16 = scalar_lea.hbm %s194_s1, 256 }
   0x2   :  { %s18_s13 = sshll.u32 %s134_s12, 4  ;;  %p87_p0 = scmp.ne.s32.totalorder %s194_s1, %s86_s16  ;;  %s19_s13 = int_to_ptr.vmem [resolvable:$true] %s18_s13 }
   0x3   :  { %p90_p1 = scmp.lt.u32.totalorder %s86_s16, %s194_s1 }
   0x5   :  { %p92_p2 = pnand %p90_p1, %p87_p0 }
   0x7   :  { %95 = shalt.err (!%p92_p2)
}
   0x8   :  { %s96_s21 = scalar_lea.vmem %s19_s13, 256  ;;  %p101_p4 = scmp.lt.s32.totalorder %s19_s13, %s19_s13 }
   0x9   :  { %p97_p3 = scmp.ne.s32.totalorder %s19_s13, %s96_s21  ;;  %p102_p5 = scmp.lt.s32.totalorder %s96_s21, %s96_s21 }
   0xb   :  { %p103_p6 = por %p102_p5, %p101_p4 }
   0xd   :  { %p104_p7 = pnand %p103_p6, %p97_p3 }
   0xf   :  { %107 = shalt.err (!%p104_p7)
}
  0x10   :  { %21 = dma.hbm_to_vmem [thread:$0]  %s194_s1, 256, %s19_s13, [#allocation4]  }
  0x11   :  { %130 = dma.done.wait [#allocation4], 256  }
  0x12   :  { %131 = vsyncadd [#allocation4], 4294967040  ;;  %vm31_vm0 = vcmask 7168   ;;  %v135_v0 = vmov 0.0   ;;  %v33_v1 = vld [vmem:[#allocation3] sm:$0xff]  ;;  %v34_v2 = vld [vmem:[#allocation3 + $0x8] sm:$0xff] }
  0x13   :  { %32 = vst.msk [vmem:[#allocation2] sm:$0xff] %vm31_vm0, %v135_v0  ;;  %v35_v3 = vld [vmem:[%s195_s2] sm:$0xff]  ;;  %v36_v4 = vld [vmem:[%s195_s2 + $0x8] sm:$0xff]  ;;  %s136_s2 = smov [#allocation6]  }
  0x14   :  { %v37_v5 = vsub.f32 %v33_v1, %v35_v3  ;;  %v38_v6 = vsub.f32 %v34_v2, %v36_v4  ;;  %v52_v13 = vld [vmem:[%s193_s0] sm:$0xff]  ;;  %s72_s29 = sshll.u32 %s136_s2, 4  ;;  %s73_s29 = int_to_ptr.vmem [resolvable:$true] %s72_s29 }
  0x15   :  { %s108_s0 = scalar_lea.vmem %s73_s29, 128  ;;  %p113_p9 = scmp.lt.s32.totalorder %s73_s29, %s73_s29 }
  0x16   :  { %v40_v7 = vmul.f32 %v37_v5, %v37_v5  ;;  %v41_v8 = vmul.f32 %v38_v6, %v38_v6  ;;  %p109_p8 = scmp.ne.s32.totalorder %s73_s29, %s108_s0  ;;  %p114_p10 = scmp.lt.s32.totalorder %s108_s0, %s108_s0 }
  0x18   :  { %v42_v9 = vadd.f32 %v41_v8, %v40_v7  ;;  %p115_p11 = por %p114_p10, %p113_p9 }
  0x1a   :  { %43 = vadd.xlane.f32.xlu0 %v42_v9  ;;  %v39_v10 = vld [vmem:[#allocation2] sm:$0xff]  ;;  %p116_p12 = pnand %p115_p11, %p109_p8 }
  0xa7   :  { %v44_v11 = vpop.xlane.xlu0 %43 }
  0xa8   :  { %v45_v12 = vadd.f32 %v44_v11, %v39_v10 }
  0xaa   :  { %47 = vst.msk [vmem:[#allocation2] sm:$0xff] %vm31_vm0, %v45_v12 }
  0xb1   :  { %v51_v14 = vld [vmem:[#allocation2] sm:$0xff] }
  0xb2   :  { %v53_v15 = vmul.f32 %v52_v13, %v51_v14 }
  0xb4   :  { %v54_v16 = vsel %vm31_vm0, %v53_v15, 0.0 }
  0xb5   :  { %55 = vadd.xlane.f32.xlu0 %v54_v16 }
 0x142   :  { %v56_v17 = vpop.xlane.xlu0 %55 }
 0x143   :  { %v57_v18 = vrot.slane %v56_v17, 4 }
 0x145   :  { %v58_v19 = vadd.f32 %v57_v18, %v56_v17 }
 0x147   :  { %v59_v20 = vrot.slane %v58_v19, 2 }
 0x149   :  { %v60_v21 = vadd.f32 %v59_v20, %v58_v19 }
 0x14b   :  { %v61_v22 = vrot.slane %v60_v21, 1 }
 0x14d   :  { %v62_v23 = vadd.f32 %v61_v22, %v60_v21 }
 0x14f   :  { %81 = vpush %v62_v23 }
 0x180   :  { %s82_s30 = spop %81 }
 0x181   :  { %v64_v24 = vstv %s82_s30 }
 0x182   :  { %65 = vst [vmem:[#allocation6] sm:$0xff] %v64_v24 }
 0x183   :  { %119 = shalt.err (!%p116_p12)
}
 0x184   :  { %s120_s6 = scalar_lea.hbm %s196_s3, 128 }
 0x185   :  { %p121_p13 = scmp.ne.s32.totalorder %s196_s3, %s120_s6  ;;  %p124_p0 = scmp.lt.u32.totalorder %s120_s6, %s196_s3 }
 0x187   :  { %p126_p1 = pnand %p124_p0, %p121_p13 }
 0x189   :  { %129 = shalt.err (!%p126_p1)
}
 0x18a   :  { %75 = dma.vmem_to_hbm [thread:$0]  %s73_s29, 128, %s196_s3, [#allocation5]  }
 0x18b   :  { %132 = dma.done.wait [#allocation5], 128  }
 0x18c   :  { %133 = vsyncadd [#allocation5], 4294967168 }
 0x18d   :  { %79 = vsyncpa [#allocation4], 1 }
 0x18e   :  { %80 = vsyncpa [#allocation5], 1 }

</bundles_post_ra>
